<compile_context>
chip_gen: v6e
topology: v6e:2x2x1
jax: 0.10.0
libtpu: 0.0.40
codegen_flags: <defaults>
</compile_context>

<pallas_src>
import jax
import jax.numpy as jnp
from jax.experimental import pallas as pl
from jax.experimental.pallas import tpu as pltpu


def _cdiv(a, b):
    return (a + b - 1) // b


def _get_mask_kernel(sam_ref, x_ref, o_ref):
    # sam_ref: (2,) scalars in SMEM; x_ref: (n_tile, C, hw_tile) f32;
    # o_ref: (n_tile, 1, hw_tile).
    x = x_ref[...]
    inv_c = jnp.float32(1.0 / x_ref.shape[1])
    avg = jnp.sum(x, axis=1, keepdims=True) * inv_c          # channel mean
    mx = jnp.max(x, axis=1, keepdims=True)                   # channel max
    w = sam_ref[0]
    b = sam_ref[1]
    o_ref[...] = jax.nn.sigmoid(w * (avg * mx) + b)          # sigmoid -> EUP


def _chip_generation():
    try:
        kind = jax.devices()[0].device_kind.lower()
    except Exception:
        return "unknown"
    if "v7" in kind or "7x" in kind:
        return "v7x"
    if "v6" in kind:
        return "v6e"
    if "v5" in kind:
        return "v5e"
    return "unknown"


# (per-input-block byte target, vmem_limit_bytes) per generation.
_BLOCK_TARGETS = {
    "v7x": (14 << 20, 48 << 20),   # 64 MiB physical VMEM: 2x14 MiB stays well under
    "v6e": (12 << 20, 64 << 20),   # 128 MiB physical, 32 MiB default scoped
    "v5e": (6 << 20, 32 << 20),    # 16 MiB default scoped: small blocks + explicit bump
    "unknown": (4 << 20, None),    # conservative: fits any default scoped limit
}


def _choose_tiles(N, C, HW, target_bytes):
    """Pick (n_tile, hw_tile): lane-dense pixel tiles, batch-blocked when spatial is small."""
    bytes_per_px_col = 4 * C                                   # one pixel, all channels, f32
    cap_hw = max(128, (target_bytes // bytes_per_px_col) // 128 * 128)
    hw_tile = HW if HW <= cap_hw else cap_hw
    if hw_tile == HW:
        # Whole image fits under the target: batch several images per grid step.
        n_tile = max(1, min(N, target_bytes // max(1, bytes_per_px_col * HW)))
    else:
        n_tile = 1
    return n_tile, hw_tile


def _balance_for_v7x(N, HW, n_tile, hw_tile):
    """Ensure >= 4 (and even, for small grids) total steps so both TCs get work."""
    for _ in range(32):
        steps = _cdiv(N, n_tile) * _cdiv(HW, hw_tile)
        if steps >= 4 and (steps % 2 == 0 or steps >= 16):
            break
        if n_tile > 1:
            n_tile = max(1, n_tile // 2)
        elif hw_tile > 128:
            hw_tile = max(128, (hw_tile // 2) // 128 * 128)
        else:
            break
    return n_tile, hw_tile


def get_mask_forward(x, sam_w, sam_b, *, n_tile=None, hw_tile=None):
    """mask = sigmoid(sam_w * (mean_c(x) * max_c(x)) + sam_b); NCHW in/out."""
    x = jnp.asarray(x, jnp.float32)
    N, C, H, W = x.shape
    HW = H * W
    x3 = x.reshape(N, C, HW)                                   # free, no transpose

    gen = _chip_generation()
    target_bytes, vmem_limit = _BLOCK_TARGETS[gen]

    auto_n, auto_hw = _choose_tiles(N, C, HW, target_bytes)
    if n_tile is None:
        n_tile = auto_n
    if hw_tile is None:
        hw_tile = auto_hw
    if gen == "v7x":
        n_tile, hw_tile = _balance_for_v7x(N, HW, n_tile, hw_tile)

    nb = _cdiv(N, n_tile)
    hb = _cdiv(HW, hw_tile)
    # Larger axis first (balanced megacore sharding on v7x); no-op on 1-TC chips.
    if hb >= nb:
        grid = (hb, nb)
        idx = lambda t, n: (n, 0, t)
    else:
        grid = (nb, hb)
        idx = lambda n, t: (n, 0, t)

    sam = jnp.stack([jnp.asarray(sam_w, jnp.float32).reshape(()),
                     jnp.asarray(sam_b, jnp.float32).reshape(())])

    cparams = dict(dimension_semantics=("parallel", "parallel"))
    if vmem_limit is not None:
        cparams["vmem_limit_bytes"] = vmem_limit

    out = pl.pallas_call(
        _get_mask_kernel,
        out_shape=jax.ShapeDtypeStruct((N, 1, HW), jnp.float32),
        grid=grid,
        in_specs=[
            pl.BlockSpec(memory_space=pltpu.MemorySpace.SMEM),     # (2,) w, b
            pl.BlockSpec((n_tile, C, hw_tile), idx),
        ],
        out_specs=pl.BlockSpec((n_tile, 1, hw_tile), idx),
        compiler_params=pltpu.CompilerParams(**cparams),
        cost_estimate=pl.CostEstimate(
            flops=int(3 * N * C * HW),                 # sum + max + pointwise
            transcendentals=int(N * HW),               # sigmoid
            bytes_accessed=int(4 * N * HW * (C + 1)),  # read x, write mask
        ),
    )(sam, x3)
    return out.reshape(N, 1, H, W)


def _get_mask_ref(x, sam_w, sam_b):
    # Pure-JAX reference of the PyTorch module.
    avg = jnp.mean(x, axis=1, keepdims=True)
    mx = jnp.max(x, axis=1, keepdims=True)
    return jax.nn.sigmoid(sam_w * (avg * mx) + sam_b)


if __name__ == "__main__":
    key = jax.random.PRNGKey(0)
    k_x, k_w, k_b = jax.random.split(key, 3)

    # Small shapes; SAM only reduces over channels, so spatial/channel sizes are free.
    N, C, H, W = 2, 4, 16, 16
    x = jax.random.normal(k_x, (N, C, H, W), jnp.float32)
    # SAM.layer[0] = Conv2d(1, 1, kernel_size=1, bias=True): scalar weight/bias.
    sam_w = 0.5 * jax.random.normal(k_w, (), jnp.float32)
    sam_b = 0.5 * jax.random.normal(k_b, (), jnp.float32)

    out = jax.jit(get_mask_forward)(x, sam_w, sam_b)
    jax.block_until_ready(out)

    ref = _get_mask_ref(x, sam_w, sam_b)
    assert out.shape == (N, 1, H, W) and out.dtype == jnp.float32
    assert jnp.allclose(out, ref, atol=1e-5, rtol=1e-5)
    print("KERNEL_OK")
</pallas_src>

<mosaic_0001>
module attributes {stable_mosaic.version = 11 : i64} {
  func.func @_get_mask_kernel(%arg0: i32, %arg1: i32, %arg2: memref<2xf32, #tpu.memory_space<smem>>, %arg3: memref<2x4x256xf32, #tpu.memory_space<vmem>>, %arg4: memref<2x1x256xf32, #tpu.memory_space<vmem>>) attributes {dimension_semantics = [#tpu.dimension_semantics<parallel>, #tpu.dimension_semantics<parallel>], iteration_bounds = array<i64: 1, 1>, scalar_prefetch = 0 : i64, scratch_operands = 0 : i64, tpu.core_type = #tpu.core_type<tc>, window_params = [{transform_indices = @transform_0, window_bounds = array<i64: 2>}, {transform_indices = @transform_1, window_bounds = array<i64: 2, 4, 256>}, {transform_indices = @transform_2, window_bounds = array<i64: 2, 1, 256>}]} {
    %c0 = arith.constant 0 : index
    %c0_0 = arith.constant 0 : index
    %c0_1 = arith.constant 0 : index
    %0 = vector.load %arg3[%c0, %c0_0, %c0_1] : memref<2x4x256xf32, #tpu.memory_space<vmem>>, vector<2x4x256xf32>
    %cst = arith.constant dense<0.000000e+00> : vector<2x256xf32>
    %1 = vector.multi_reduction <add>, %0, %cst [1] : vector<2x4x256xf32> to vector<2x256xf32>
    %2 = vector.shape_cast %1 : vector<2x256xf32> to vector<2x1x256xf32>
    %cst_2 = arith.constant 2.500000e-01 : f32
    %3 = vector.broadcast %cst_2 : f32 to vector<2x1x256xf32>
    %4 = arith.mulf %2, %3 : vector<2x1x256xf32>
    %cst_3 = arith.constant dense<0xFF800000> : vector<2x256xf32>
    %5 = vector.multi_reduction <maximumf>, %0, %cst_3 [1] : vector<2x4x256xf32> to vector<2x256xf32>
    %6 = vector.shape_cast %5 : vector<2x256xf32> to vector<2x1x256xf32>
    %c0_4 = arith.constant 0 : index
    %7 = memref.load %arg2[%c0_4] : memref<2xf32, #tpu.memory_space<smem>>
    %c1 = arith.constant 1 : index
    %8 = memref.load %arg2[%c1] : memref<2xf32, #tpu.memory_space<smem>>
    %9 = arith.mulf %4, %6 : vector<2x1x256xf32>
    %10 = vector.broadcast %7 : f32 to vector<2x1x256xf32>
    %11 = arith.mulf %10, %9 : vector<2x1x256xf32>
    %12 = vector.broadcast %8 : f32 to vector<2x1x256xf32>
    %13 = arith.addf %11, %12 : vector<2x1x256xf32>
    %14 = arith.negf %13 : vector<2x1x256xf32>
    %15 = math.exp %14 : vector<2x1x256xf32>
    %cst_5 = arith.constant 1.000000e+00 : f32
    %16 = vector.broadcast %cst_5 : f32 to vector<2x1x256xf32>
    %17 = arith.addf %16, %15 : vector<2x1x256xf32>
    %18 = arith.divf %16, %17 : vector<2x1x256xf32>
    %c0_6 = arith.constant 0 : index
    %c0_7 = arith.constant 0 : index
    %c0_8 = arith.constant 0 : index
    %19 = vector.load %arg4[%c0_6, %c0_7, %c0_8] : memref<2x1x256xf32, #tpu.memory_space<vmem>>, vector<2x1x256xf32>
    tpu.vector_store %arg4[%c0_6, %c0_7, %c0_8], %18 {strides = array<i32>} : memref<2x1x256xf32, #tpu.memory_space<vmem>>, vector<2x1x256xf32>,
    return
  }
  func.func @transform_0(%arg0: i32, %arg1: i32) -> i32 {
    %c0_i32 = arith.constant 0 : i32
    %c0_i32_0 = arith.constant 0 : i32
    return %c0_i32 : i32
  }
  func.func @transform_1(%arg0: i32, %arg1: i32) -> (i32, i32, i32) {
    %c0_i32 = arith.constant 0 : i32
    %c0_i32_0 = arith.constant 0 : i32
    return %arg1, %c0_i32, %arg0 : i32, i32, i32
  }
  func.func @transform_2(%arg0: i32, %arg1: i32) -> (i32, i32, i32) {
    %c0_i32 = arith.constant 0 : i32
    %c0_i32_0 = arith.constant 0 : i32
    return %arg1, %c0_i32, %arg0 : i32, i32, i32
  }
}

</mosaic_0001>

<bundles_post_ra>
// kernel: get_mask_forward.1
= control target key start
LH: loop header
LB: loop body
LE: loop exit
PB: predicated region body
PF: predicated region fallthrough
CT: control target
= control target key end

     0   :  { %7 = vsyncpa [#allocation3], 0  ;;  %s265_s0 = inlined_call_operand.vmem [shape: f32[2], index: 0, kind: input, shape index: {}]   ;;  %s266_s1 = inlined_call_operand.vmem [shape: f32[2,4,256], index: 1, kind: input, shape index: {}]   ;;  %s267_s2 = inlined_call_operand.vmem [shape: f32[2,1,256], index: 2, kind: output, shape index: {}]  }
   0x1   :  { %s14_s11 = sshll.u32 %s265_s0, 4  ;;  %s15_s11 = int_to_ptr.vmem [resolvable:$true] %s14_s11 }
   0x2   :  { %s205_s12 = scalar_lea.vmem %s15_s11, 16  ;;  %p210_p1 = scmp.lt.s32.totalorder %s15_s11, %s15_s11 }
   0x3   :  { %p206_p0 = scmp.ne.s32.totalorder %s15_s11, %s205_s12  ;;  %p211_p2 = scmp.lt.s32.totalorder %s205_s12, %s205_s12 }
   0x5   :  { %p212_p3 = por %p211_p2, %p210_p1 }
   0x7   :  { %p213_p4 = pnand %p212_p3, %p206_p0 }
   0x9   :  { %216 = shalt.err (!%p213_p4)
}
   0xa   :  { %s219_s13 = smov [#allocation2]  }
   0xb   :  { %17 = dma.vmem_to_smem %s15_s11, 16, %s219_s13, [#allocation3]  }
   0xc   :  { %217 = dma.done.wait [#allocation3], 16  }
   0xd   :  { %218 = vsyncadd [#allocation3], 4294967280 }
   0xe   :  { %23 = sfence }
   0xf   :  { %v24_v0 = vld [vmem:[%s266_s1] sm:$0xff]  ;;  %vm32_vm0 = vcmask 1043456   ;;  %v25_v4 = vld [vmem:[%s266_s1 + $0x8] sm:$0xff]  ;;  %s252_s1 = sld [smem:[#allocation2]] }
  0x10   :  { %v28_v1 = vcombine.high %v24_v0, %v24_v0  ;;  %v33_v2 = vsel %vm32_vm0, %v24_v0, 0.0  ;;  %v65_v3 = vsel %vm32_vm0, %v24_v0, -inf  ;;  %v29_v9 = vcombine.high %v25_v4, %v25_v4  ;;  %s254_s17 = sld [smem:[#allocation2 + $0x1]] }
  0x11   :  { %v34_v5 = vrot.slane %v33_v2, 4  ;;  %v66_v6 = vrot.slane %v65_v3, 4  ;;  %v47_v14 = vsel %vm32_vm0, %v25_v4, 0.0  ;;  %v79_v16 = vsel %vm32_vm0, %v25_v4, -inf }
  0x12   :  { %v40_v7 = vsel %vm32_vm0, %v28_v1, 0.0  ;;  %v72_v8 = vsel %vm32_vm0, %v28_v1, -inf  ;;  %v54_v15 = vsel %vm32_vm0, %v29_v9, 0.0  ;;  %v48_v21 = vrot.slane %v47_v14, 4 }
  0x13   :  { %v35_v10 = vadd.f32 %v34_v5, %v33_v2  ;;  %v41_v11 = vrot.slane %v40_v7, 4  ;;  %v67_v12 = vmax.f32 %v65_v3, %v66_v6  ;;  %v73_v13 = vrot.slane %v72_v8, 4 }
  0x14   :  { %v55_v22 = vrot.slane %v54_v15, 4  ;;  %v49_v27 = vadd.f32 %v48_v21, %v47_v14  ;;  %v80_v29 = vrot.slane %v79_v16, 4  ;;  %v86_v30 = vsel %vm32_vm0, %v29_v9, -inf }
  0x15   :  { %v36_v17 = vrot.slane %v35_v10, 2  ;;  %v42_v18 = vadd.f32 %v41_v11, %v40_v7  ;;  %v68_v19 = vrot.slane %v67_v12, 2  ;;  %v74_v20 = vmax.f32 %v72_v8, %v73_v13 }
  0x16   :  { %v56_v28 = vadd.f32 %v55_v22, %v54_v15  ;;  %v50_v35 = vrot.slane %v49_v27, 2  ;;  %v81_v37 = vmax.f32 %v79_v16, %v80_v29  ;;  %v87_v38 = vrot.slane %v86_v30, 4 }
  0x17   :  { %v37_v23 = vadd.f32 %v36_v17, %v35_v10  ;;  %v43_v24 = vrot.slane %v42_v18, 2  ;;  %v69_v25 = vmax.f32 %v67_v12, %v68_v19  ;;  %v75_v26 = vrot.slane %v74_v20, 2 }
  0x18   :  { %v57_v36 = vrot.slane %v56_v28, 2  ;;  %v51_v43 = vadd.f32 %v50_v35, %v49_v27  ;;  %v82_v45 = vrot.slane %v81_v37, 2  ;;  %v88_v46 = vmax.f32 %v86_v30, %v87_v38 }
  0x19   :  { %v38_v31 = vrot.slane %v37_v23, 1  ;;  %v44_v32 = vadd.f32 %v43_v24, %v42_v18  ;;  %v70_v33 = vrot.slane %v69_v25, 1  ;;  %v76_v34 = vmax.f32 %v74_v20, %v75_v26 }
  0x1a   :  { %v58_v44 = vadd.f32 %v57_v36, %v56_v28  ;;  %v99_v50 = vstv %s252_s1  ;;  %v52_v51 = vrot.slane %v51_v43, 1  ;;  %v83_v53 = vmax.f32 %v81_v37, %v82_v45 }
  0x1b   :  { %v39_v39 = vadd.f32 %v38_v31, %v37_v23  ;;  %v45_v40 = vrot.slane %v44_v32, 1  ;;  %v71_v41 = vmax.f32 %v69_v25, %v70_v33  ;;  %v77_v42 = vrot.slane %v76_v34, 1 }
  0x1c   :  { %v59_v52 = vrot.slane %v58_v44, 1  ;;  %v89_v54 = vrot.slane %v88_v46, 2  ;;  %v104_v57 = vstv %s254_s17  ;;  %v53_v58 = vadd.f32 %v52_v51, %v51_v43 }
  0x1d   :  { %v46_v47 = vadd.f32 %v45_v40, %v44_v32  ;;  %v61_v48 = vmul.f32 0.25, %v39_v39  ;;  %v78_v49 = vmax.f32 %v76_v34, %v77_v42  ;;  %v84_v60 = vrot.slane %v83_v53, 1 }
  0x1e   :  { %v60_v59 = vadd.f32 %v59_v52, %v58_v44  ;;  %v90_v61 = vmax.f32 %v88_v46, %v89_v54  ;;  %v63_v0 = vmul.f32 0.25, %v53_v58  ;;  %v220_v26 = vmov 1966171168  }
  0x1f   :  { %v62_v55 = vmul.f32 0.25, %v46_v47  ;;  %v95_v56 = vmul.f32 %v71_v41, %v61_v48  ;;  %v85_v2 = vmax.f32 %v83_v53, %v84_v60  ;;  %v139_v27 = vunpack.c.l.s4 %v220_v26 }
  0x20   :  { %v64_v1 = vmul.f32 0.25, %v60_v59  ;;  %v91_v3 = vrot.slane %v90_v61, 1  ;;  %v141_v28 = vlaneseq }
  0x21   :  { %v96_v62 = vmul.f32 %v78_v49, %v62_v55  ;;  %v100_v63 = vmul.f32 %v99_v50, %v95_v56  ;;  %v97_v7 = vmul.f32 %v85_v2, %v63_v0  ;;  %v140_v29 = vunpack.c.0.s8 %v139_v27 }
  0x22   :  { %v92_v6 = vmax.f32 %v90_v61, %v91_v3  ;;  %v142_v30 = vshrl.u32 %v141_v28, 7  ;;  %vm171_vm1 = vcmp.lt.s32.totalorder %v141_v28, 256 }
  0x23   :  { %v101_v4 = vmul.f32 %v99_v50, %v96_v62  ;;  %v105_v5 = vadd.f32 %v104_v57, %v100_v63  ;;  %v102_v11 = vmul.f32 %v99_v50, %v97_v7 }
  0x24   :  { %v98_v10 = vmul.f32 %v92_v6, %v64_v1  ;;  %v143_v32 = vsub.s32 %v140_v29, %v142_v30 }
  0x25   :  { %v106_v8 = vadd.f32 %v104_v57, %v101_v4  ;;  %v181_v9 = vmul.f32 -1.442695, %v105_v5  ;;  %v107_v14 = vadd.f32 %v104_v57, %v102_v11 }
  0x26   :  { %v103_v13 = vmul.f32 %v99_v50, %v98_v10 }
  0x27   :  { %189 = vpow2.f32 %v181_v9  ;;  %v182_v12 = vmul.f32 -1.442695, %v106_v8  ;;  %v183_v16 = vmul.f32 -1.442695, %v107_v14 }
  0x28   :  { %v108_v15 = vadd.f32 %v104_v57, %v103_v13 }
  0x29   :  { %191 = vpow2.f32 %v182_v12 }
  0x2a   :  { %193 = vpow2.f32 %v183_v16  ;;  %v184_v17 = vmul.f32 -1.442695, %v108_v15 }
  0x2c   :  { %195 = vpow2.f32 %v184_v17 }
  0x34   :  { %v190_v18 = vpop.eup %189 }
  0x35   :  { %v121_v19 = vadd.f32 1.0, %v190_v18 }
  0x36   :  { %v192_v20 = vpop.eup %191 }
  0x37   :  { %v122_v21 = vadd.f32 1.0, %v192_v20  ;;  %197 = vrcp.f32 %v121_v19  ;;  %v194_v22 = vpop.eup %193 }
  0x38   :  { %v123_v23 = vadd.f32 1.0, %v194_v22 }
  0x39   :  { %199 = vrcp.f32 %v122_v21  ;;  %v196_v24 = vpop.eup %195 }
  0x3a   :  { %v124_v25 = vadd.f32 1.0, %v196_v24  ;;  %201 = vrcp.f32 %v123_v23 }
  0x3c   :  { %203 = vrcp.f32 %v124_v25 }
  0x44   :  { %v198_v31 = vpop.eup %197 }
  0x46   :  { %v200_v33 = vpop.eup %199 }
  0x47   :  { %v137_v34 = vcombine.low %v198_v31, %v200_v33  ;;  %v202_v35 = vpop.eup %201 }
  0x49   :  { %v144_v36 = vrot.slane %v137_v34, %v143_v32  ;;  %v204_v37 = vpop.eup %203 }
  0x4a   :  { %v152_v39 = vcombine.low %v202_v35, %v204_v37 }
  0x4b   :  { %v151_v38 = vrot.slane %v144_v36, %v143_v32 }
  0x4c   :  { %v159_v40 = vrot.slane %v152_v39, %v143_v32 }
  0x4d   :  { %173 = vst.msk [vmem:[%s267_s2] sm:$0x3] %vm171_vm1, %v151_v38 }
  0x4e   :  { %v166_v41 = vrot.slane %v159_v40, %v143_v32 }
  0x50   :  { %174 = vst.msk [vmem:[%s267_s2 + $0x2] sm:$0x3] %vm171_vm1, %v166_v41 }
  0x51   :  { %179 = vsyncpa [#allocation3], 1 }

</bundles_post_ra>
